<compile_context>
chip_gen: v7x
topology: tpu7x:2x2x1
jax: 0.10.0
libtpu: 0.0.40
codegen_flags: <defaults>
</compile_context>

<pallas_src>
import jax
import jax.numpy as jnp
from jax.experimental import pallas as pl
from jax.experimental.pallas import tpu as pltpu


NUM_PATCHES = (int(224 * 0.75) // 24) ** 2   # 49
NUM_TOKENS = 1                               # cls token
EMBED_DIM = 64                               # patchembed default embed_dim


def _cls_pos_kernel(x_ref, cls_ref, pos_ref, o_ref):
    # x_ref:   (TB, N*D)      batch tile of patch tokens, flattened per row
    # cls_ref: (1,  D)        class token (shared across batch)
    # pos_ref: (1,  (N+1)*D)  positional embedding, flattened (shared)
    # o_ref:   (TB, (N+1)*D)  output tile, lane-dense flattened
    tb = x_ref.shape[0]
    d = cls_ref.shape[-1]

    # Region store 1: class token + its positional slice, broadcast over batch.
    cls_plus_pos = cls_ref[...] + pos_ref[:, :d]                       # (1, D)
    o_ref[:, :d] = jnp.broadcast_to(cls_plus_pos, (tb, d)).astype(o_ref.dtype)

    # Region store 2: patch tokens + remaining positional slice, written at
    # lane offset D (no materialized concat temp; shift handled by XLU).
    o_ref[:, d:] = (x_ref[...] + pos_ref[:, d:]).astype(o_ref.dtype)


def _pick_batch_tile(B, elem_bytes, in_flat, out_flat,
                     vmem_budget_bytes=8 * 1024 * 1024):
    """Pick a batch tile under a conservative double-buffered VMEM budget.

    Rules applied:
      * dtype-aware sublane multiple: 8 (f32) / 16 (bf16) / 32 (int8/fp8);
      * returned tile is either == B (full extent) or a multiple of that
        sublane count, so block shapes never violate the (8,128) rule;
      * if the whole batch fits in one block but B is large enough, split
        into >=2 steps so both v7x TensorCores get work (no-op on v5e/v6e).
    Ragged tails (B % tb != 0) are handled by pl.cdiv grids + Pallas masking.
    """
    sub = max(8, 32 // max(1, elem_bytes))        # sublane group per dtype
    per_b = 2 * (in_flat + out_flat) * elem_bytes  # 2x for double buffering
    cap = max(1, vmem_budget_bytes // per_b)

    if B <= cap:
        tb = B
    else:
        tb = None
        d = sub
        while d <= cap:
            if B % d == 0:
                tb = d
            d += sub
        if tb is None:
            # No dividing sublane-multiple fits: largest sublane-aligned tile
            # that fits; the ragged last block is edge-masked by Pallas.
            tb = (cap // sub) * sub
            if tb == 0:
                tb = min(B, sub)

    # v7x: guarantee >=2 grid steps when B is big enough so the "parallel"
    # batch axis can be sharded across both TensorCores.
    if tb == B and B >= 2 * sub:
        half = ((B // 2) // sub) * sub
        if half >= sub:
            tb = half
    return tb


def class_token_pos_embed_forward(x, cls_token, pos_embed, *, batch_tile=None):
    """x: (B, N, D); cls_token: (1, 1, D); pos_embed: (1, N+1, D) -> (B, N+1, D)."""
    B, N, D = x.shape
    assert cls_token.shape == (1, 1, D)
    T = N + NUM_TOKENS
    assert pos_embed.shape == (1, T, D)

    in_flat = N * D          # 3136 for (49, 64)
    out_flat = T * D         # 3200 = 25 * 128 -> lane-dense output rows

    # Free (contiguous) reshapes in the wrapper to lane-dense 2-D views.
    x2 = x.reshape(B, in_flat)
    cls2 = cls_token.reshape(1, D)
    pos2 = pos_embed.reshape(1, out_flat)

    elem_bytes = jnp.dtype(x.dtype).itemsize
    tb = batch_tile if batch_tile is not None else _pick_batch_tile(
        B, elem_bytes, in_flat, out_flat)
    tb = max(1, min(tb, B))
    grid = (pl.cdiv(B, tb),)

    cost = pl.CostEstimate(
        flops=B * T * D,
        transcendentals=0,
        bytes_accessed=(B * in_flat + B * out_flat + out_flat + D) * elem_bytes,
    )

    out2 = pl.pallas_call(
        _cls_pos_kernel,
        out_shape=jax.ShapeDtypeStruct((B, out_flat), x.dtype),
        grid_spec=pltpu.PrefetchScalarGridSpec(
            num_scalar_prefetch=0,
            grid=grid,
            in_specs=[
                pl.BlockSpec((tb, in_flat), lambda i: (i, 0)),
                # Constant block index -> DMA'd once, reused across grid steps.
                pl.BlockSpec((1, D), lambda i: (0, 0)),
                pl.BlockSpec((1, out_flat), lambda i: (0, 0)),
            ],
            out_specs=pl.BlockSpec((tb, out_flat), lambda i: (i, 0)),
        ),
        compiler_params=pltpu.CompilerParams(
            # Shards batch tiles across the two TensorCores on v7x whenever the
            # grid has >= 2 steps; harmless single-step grid for tiny B.
            dimension_semantics=("parallel",),
        ),
        cost_estimate=cost,
    )(x2, cls2, pos2)

    return out2.reshape(B, T, D)


def _trunc_normal(key, shape, std=0.02, dtype=jnp.float32):
    # Matches nn.init.trunc_normal_(std=0.02) default truncation at +/- 2 std.
    return (jax.random.truncated_normal(key, -2.0, 2.0, shape, dtype) * std).astype(dtype)


if __name__ == "__main__":
    key = jax.random.PRNGKey(0)
    k_x, k_pos, k_cls = jax.random.split(key, 3)

    B, N, D = 2, NUM_PATCHES, EMBED_DIM   # (2, 49, 64)

    # Deterministic parameter init (synthetic, mirrors module __init__ shapes).
    cls_token = _trunc_normal(k_cls, (1, 1, D))
    pos_embed = _trunc_normal(k_pos, (1, N + NUM_TOKENS, D))

    # Example input: output of a patchembed-like stage, shape (B, num_patches, embed_dim)
    x = jax.random.normal(k_x, (B, N, D), dtype=jnp.float32)

    out = class_token_pos_embed_forward(x, cls_token, pos_embed)
    out = jax.block_until_ready(out)

    # Reference check in plain JAX (same semantics as the PyTorch forward).
    ref = jnp.concatenate([jnp.broadcast_to(cls_token, (B, 1, D)), x], axis=1) + pos_embed
    assert out.shape == (B, N + NUM_TOKENS, D)
    assert jnp.allclose(out, ref, atol=1e-6), "mismatch vs reference"

    print("KERNEL_OK")
</pallas_src>

<mosaic_0001>
module attributes {stable_mosaic.version = 11 : i64} {
  func.func @_cls_pos_kernel(%arg0: i32, %arg1: memref<2x3136xf32, #tpu.memory_space<vmem>>, %arg2: memref<1x64xf32, #tpu.memory_space<vmem>>, %arg3: memref<1x3200xf32, #tpu.memory_space<vmem>>, %arg4: memref<2x3200xf32, #tpu.memory_space<vmem>>) attributes {dimension_semantics = [#tpu.dimension_semantics<parallel>], iteration_bounds = array<i64: 1>, scalar_prefetch = 0 : i64, scratch_operands = 0 : i64, tpu.core_type = #tpu.core_type<tc>, window_params = [{transform_indices = @transform_0, window_bounds = array<i64: 2, 3136>}, {pipeline_mode = #tpu.pipeline_mode<synchronous>, transform_indices = @transform_1, window_bounds = array<i64: 1, 64>}, {pipeline_mode = #tpu.pipeline_mode<synchronous>, transform_indices = @transform_2, window_bounds = array<i64: 1, 3200>}, {transform_indices = @transform_3, window_bounds = array<i64: 2, 3200>}]} {
    %c0 = arith.constant 0 : index
    %c0_0 = arith.constant 0 : index
    %0 = vector.load %arg2[%c0, %c0_0] : memref<1x64xf32, #tpu.memory_space<vmem>>, vector<1x64xf32>
    %c0_1 = arith.constant 0 : index
    %c0_2 = arith.constant 0 : index
    %1 = vector.load %arg3[%c0_1, %c0_2] : memref<1x3200xf32, #tpu.memory_space<vmem>>, vector<1x64xf32>
    %2 = arith.addf %0, %1 : vector<1x64xf32>
    %3 = vector.shape_cast %2 : vector<1x64xf32> to vector<1x64xf32>
    %4 = vector.broadcast %3 : vector<1x64xf32> to vector<2x64xf32>
    %c0_3 = arith.constant 0 : index
    %c0_4 = arith.constant 0 : index
    %5 = vector.load %arg4[%c0_3, %c0_4] : memref<2x3200xf32, #tpu.memory_space<vmem>>, vector<2x64xf32>
    tpu.vector_store %arg4[%c0_3, %c0_4], %4 {strides = array<i32>} : memref<2x3200xf32, #tpu.memory_space<vmem>>, vector<2x64xf32>,
    %c0_5 = arith.constant 0 : index
    %c0_6 = arith.constant 0 : index
    %6 = vector.load %arg1[%c0_5, %c0_6] : memref<2x3136xf32, #tpu.memory_space<vmem>>, vector<2x3136xf32>
    %c0_7 = arith.constant 0 : index
    %c64 = arith.constant 64 : index
    %7 = vector.load %arg3[%c0_7, %c64] : memref<1x3200xf32, #tpu.memory_space<vmem>>, vector<1x3136xf32>
    %8 = vector.broadcast %7 : vector<1x3136xf32> to vector<2x3136xf32>
    %9 = arith.addf %6, %8 : vector<2x3136xf32>
    %c0_8 = arith.constant 0 : index
    %c64_9 = arith.constant 64 : index
    %10 = vector.load %arg4[%c0_8, %c64_9] : memref<2x3200xf32, #tpu.memory_space<vmem>>, vector<2x3136xf32>
    tpu.vector_store %arg4[%c0_8, %c64_9], %9 {strides = array<i32>} : memref<2x3200xf32, #tpu.memory_space<vmem>>, vector<2x3136xf32>,
    return
  }
  func.func @transform_0(%arg0: i32) -> (i32, i32) {
    %c0_i32 = arith.constant 0 : i32
    %c0_i32_0 = arith.constant 0 : i32
    return %arg0, %c0_i32 : i32, i32
  }
  func.func @transform_1(%arg0: i32) -> (i32, i32) {
    %c0_i32 = arith.constant 0 : i32
    %c0_i32_0 = arith.constant 0 : i32
    %c0_i32_1 = arith.constant 0 : i32
    return %c0_i32, %c0_i32_0 : i32, i32
  }
  func.func @transform_2(%arg0: i32) -> (i32, i32) {
    %c0_i32 = arith.constant 0 : i32
    %c0_i32_0 = arith.constant 0 : i32
    %c0_i32_1 = arith.constant 0 : i32
    return %c0_i32, %c0_i32_0 : i32, i32
  }
  func.func @transform_3(%arg0: i32) -> (i32, i32) {
    %c0_i32 = arith.constant 0 : i32
    %c0_i32_0 = arith.constant 0 : i32
    return %arg0, %c0_i32 : i32, i32
  }
}

</mosaic_0001>

<bundles_post_ra>
// kernel: tpu_custom_call.1
= control target key start
LH: loop header
LB: loop body
LE: loop exit
PB: predicated region body
PF: predicated region fallthrough
CT: control target
= control target key end

     0   :  { %8 = vsyncpa [#allocation3], 0  ;;  %s611_s0 = inlined_call_operand.hbm [shape: f32[2,3136], index: 0, kind: input, shape index: {}]   ;;  %s612_s1 = inlined_call_operand.vmem [shape: f32[1,64], index: 1, kind: input, shape index: {}]   ;;  %s613_s2 = inlined_call_operand.hbm [shape: f32[1,3200], index: 2, kind: input, shape index: {}]   ;;  %s614_s3 = inlined_call_operand.hbm [shape: f32[2,3200], index: 3, kind: output, shape index: {}]  }
   0x1   :  { %9 = vsyncpa [#allocation6], 0 }
   0x2   :  { %10 = vsyncpa [#allocation4], 0  ;;  %s478_s12 = smov [#allocation2]   ;;  %s479_s14 = smov [#allocation5]  }
   0x3   :  { %s17_s13 = sshll.u32 %s478_s12, 4  ;;  %s29_s15 = sshll.u32 %s479_s14, 4  ;;  %s18_s13 = int_to_ptr.vmem [resolvable:$true] %s17_s13  ;;  %s30_s15 = int_to_ptr.vmem [resolvable:$true] %s29_s15 }
   0x4   :  { %s406_s18 = scalar_lea.hbm %s611_s0, 800 }
   0x5   :  { %p407_p0 = scmp.ne.s32.totalorder %s611_s0, %s406_s18  ;;  %p410_p1 = scmp.lt.u32.totalorder %s406_s18, %s611_s0 }
   0x7   :  { %p412_p2 = pnand %p410_p1, %p407_p0 }
   0x9   :  { %415 = shalt.err (!%p412_p2)
}
   0xa   :  { %s416_s23 = scalar_lea.vmem %s18_s13, 800  ;;  %p421_p4 = scmp.lt.s32.totalorder %s18_s13, %s18_s13 }
   0xb   :  { %p417_p3 = scmp.ne.s32.totalorder %s18_s13, %s416_s23  ;;  %p422_p5 = scmp.lt.s32.totalorder %s416_s23, %s416_s23 }
   0xd   :  { %p423_p6 = por %p422_p5, %p421_p4 }
   0xf   :  { %p424_p7 = pnand %p423_p6, %p417_p3 }
  0x11   :  { %427 = shalt.err (!%p424_p7)
}
  0x12   :  { %20 = dma.hbm_to_vmem [thread:$0]  %s611_s0, 800, %s18_s13, [#allocation3]  }
  0x13   :  { %s428_s28 = scalar_lea.hbm %s613_s2, 400 }
  0x14   :  { %p429_p8 = scmp.ne.s32.totalorder %s613_s2, %s428_s28  ;;  %p432_p9 = scmp.lt.u32.totalorder %s428_s28, %s613_s2 }
  0x16   :  { %p434_p10 = pnand %p432_p9, %p429_p8 }
  0x18   :  { %437 = shalt.err (!%p434_p10)
}
  0x19   :  { %s438_s6 = scalar_lea.vmem %s30_s15, 400  ;;  %s442_s7 = scalar_lea.vmem %s30_s15, 416 }
  0x1a   :  { %p439_p11 = scmp.ne.s32.totalorder %s30_s15, %s438_s6  ;;  %p443_p12 = scmp.lt.s32.totalorder %s30_s15, %s30_s15 }
  0x1b   :  { %p444_p13 = scmp.lt.s32.totalorder %s442_s7, %s438_s6 }
  0x1d   :  { %p445_p0 = por %p444_p13, %p443_p12 }
  0x1f   :  { %p446_p1 = pnand %p445_p0, %p439_p11 }
  0x21   :  { %449 = shalt.err (!%p446_p1)
}
  0x22   :  { %32 = dma.hbm_to_vmem [thread:$0]  %s613_s2, 400, %s30_s15, [#allocation6]  }
  0x23   :  { %472 = dma.done.wait [#allocation3], 800  }
  0x24   :  { %473 = vsyncadd [#allocation3], 4294966496 }
  0x25   :  { %474 = dma.done.wait [#allocation6], 400  }
  0x26   :  { %475 = vsyncadd [#allocation6], 4294966896  ;;  %v43_v0 = vlaneseq  ;;  %v480_v1 = vmov 1983009808   ;;  %v58_v11 = vld [vmem:[#allocation5 + $0x8] sm:$0xff]  ;;  %v57_v13 = vld [vmem:[#allocation5] sm:$0xff] }
  0x27   :  { %v168_v2 = vunpack.c.l.s4 %v480_v1  ;;  %v59_v36 = vld [vmem:[#allocation5 + $0x10] sm:$0xff]  ;;  %s481_s2 = smov 64   ;;  %vm48_vm0 = vcmask 517120   ;;  %vm295_vm1 = vcmask 1045504   ;;  %vm297_vm2 = vcmask 523264  }
  0x28   :  { %v44_v3 = vshrl.u32 %v43_v0, 7  ;;  %vm370_vm3 = vcmask 1041920   ;;  %vm371_vm4 = vcmask 1043458   ;;  %vm373_vm6 = vcmask 1045508  }
  0x29   :  { %v169_v4 = vunpack.c.0.s8 %v168_v2  ;;  %vm372_vm5 = vmor %vm371_vm4, %vm370_vm3  ;;  %vm375_vm8 = vcmask 1047558   ;;  %vm351_vm9 = vcmask 1041408  }
  0x2a   :  { %v527_v5 = vsub.s32 0, %v44_v3  ;;  %v71_v6 = vsub.s32 1, %v44_v3  ;;  %v529_v7 = vsub.s32 2, %v44_v3  ;;  %v531_v8 = vsub.s32 3, %v44_v3  ;;  %vm374_vm7 = vmor %vm373_vm6, %vm372_vm5 }
  0x2b   :  { %v83_v9 = vsub.s32 4, %v44_v3  ;;  %v87_v10 = vsub.s32 5, %v44_v3  ;;  %v533_v12 = vsub.s32 %v169_v4, %v44_v3  ;;  %v91_v14 = vsub.s32 6, %v44_v3  ;;  %vm376_vm10 = vmor %vm375_vm8, %vm374_vm7 }
  0x2c   :  { %v95_v15 = vsub.s32 7, %v44_v3  ;;  %v100_v16 = vrot.slane %v58_v11, %v527_v5  ;;  %v104_v17 = vrot.slane %v58_v11, %v71_v6  ;;  %v108_v18 = vrot.slane %v58_v11, %v529_v7 }
  0x2d   :  { %v112_v19 = vrot.slane %v58_v11, %v531_v8  ;;  %v68_v20 = vrot.slane %v57_v13, %v527_v5  ;;  %v72_v21 = vrot.slane %v57_v13, %v71_v6  ;;  %v76_v22 = vrot.slane %v57_v13, %v529_v7 }
  0x2e   :  { %v80_v23 = vrot.slane %v57_v13, %v531_v8  ;;  %v199_v24 = vcombine.low %v100_v16, %v104_v17  ;;  %v116_v26 = vrot.slane %v58_v11, %v83_v9  ;;  %v120_v27 = vrot.slane %v58_v11, %v87_v10 }
  0x2f   :  { %v200_v25 = vcombine.low %v108_v18, %v112_v19  ;;  %v165_v28 = vcombine.low %v68_v20, %v72_v21  ;;  %v124_v30 = vrot.slane %v58_v11, %v91_v14  ;;  %v128_v31 = vrot.slane %v58_v11, %v95_v15  ;;  %v40_v11 = vld [vmem:[#allocation5] sm:$0x1] }
  0x30   :  { %v166_v29 = vcombine.low %v76_v22, %v80_v23  ;;  %v207_v32 = vrot.slane %v199_v24, %v533_v12  ;;  %v216_v34 = vcombine.low %v116_v26, %v120_v27  ;;  %v84_v35 = vrot.slane %v57_v13, %v83_v9  ;;  %v51_v22 = vld [vmem:[#allocation2 + $0x8] sm:$0xff]  ;;  %v50_v24 = vld [vmem:[#allocation2] sm:$0xff] }
  0x31   :  { %v214_v33 = vrot.slane %v200_v25, %v533_v12  ;;  %v173_v37 = vrot.slane %v165_v28, %v533_v12  ;;  %v217_v39 = vcombine.low %v124_v30, %v128_v31  ;;  %v88_v40 = vrot.slane %v57_v13, %v87_v10 }
  0x32   :  { %v180_v38 = vrot.slane %v166_v29, %v533_v12  ;;  %v224_v42 = vrot.slane %v216_v34, %v533_v12  ;;  %v92_v43 = vrot.slane %v57_v13, %v91_v14  ;;  %v96_v44 = vrot.slane %v57_v13, %v95_v15  ;;  %v52_v34 = vld [vmem:[#allocation2 + $0x10] sm:$0xff] }
  0x33   :  { %v215_v41 = vcombine.low %v207_v32, %v214_v33  ;;  %v231_v46 = vrot.slane %v217_v39, %v533_v12  ;;  %v182_v47 = vcombine.low %v84_v35, %v88_v40  ;;  %v148_v48 = vrot.slane %v59_v36, %v83_v9 }
  0x34   :  { %v181_v45 = vcombine.low %v173_v37, %v180_v38  ;;  %v183_v49 = vcombine.low %v92_v43, %v96_v44  ;;  %v152_v50 = vrot.slane %v59_v36, %v87_v10  ;;  %v156_v51 = vrot.slane %v59_v36, %v91_v14  ;;  %v39_v10 = vld [vmem:[%s612_s1] sm:$0x1]  ;;  %s482_s1 = smov [#allocation7]  }
  0x35   :  { %278 = vrot.lane.b32.xlu1 %v215_v41, %s481_s2  ;;  %v160_v52 = vrot.slane %v59_v36, %v95_v15  ;;  %v232_v53 = vcombine.low %v224_v42, %v231_v46  ;;  %v190_v54 = vrot.slane %v182_v47, %v533_v12  ;;  %v132_v55 = vrot.slane %v59_v36, %v527_v5  ;;  %v54_v42 = vld [vmem:[#allocation2 + $0x20] sm:$0xff]  ;;  %v55_v46 = vld [vmem:[#allocation2 + $0x28] sm:$0xff]  ;;  %s390_s11 = sshll.u32 %s482_s1, 4  ;;  %s391_s11 = int_to_ptr.vmem [resolvable:$true] %s390_s11 }
  0x36   :  { %274 = vrot.lane.b32.xlu0 %v181_v45, %s481_s2  ;;  %v136_v56 = vrot.slane %v59_v36, %v71_v6  ;;  %v197_v57 = vrot.slane %v183_v49, %v533_v12  ;;  %v250_v58 = vcombine.low %v148_v48, %v152_v50  ;;  %v140_v60 = vrot.slane %v59_v36, %v529_v7  ;;  %v400_v7 = vld [vmem:[#allocation5 + $0x18] ss:$0 sm:$0xff]  ;;  %v56_v50 = vld [vmem:[#allocation2 + $0x30] sm:$0x3]  ;;  %s450_s12 = scalar_lea.vmem %s391_s11, 800  ;;  %p455_p3 = scmp.lt.s32.totalorder %s391_s11, %s391_s11 }
  0x37   :  { %v251_v59 = vcombine.low %v156_v51, %v160_v52  ;;  %v144_v61 = vrot.slane %v59_v36, %v531_v8  ;;  %v273_v9 = vrot.slane %v400_v7, %v533_v12  ;;  %v41_v13 = vadd.f32 %v40_v11, %v39_v10  ;;  %v53_v36 = vld [vmem:[#allocation2 + $0x18] sm:$0xff]  ;;  %p451_p2 = scmp.ne.s32.totalorder %s391_s11, %s450_s12  ;;  %p456_p4 = scmp.lt.s32.totalorder %s450_s12, %s450_s12 }
  0x38   :  { %v233_v62 = vcombine.low %v132_v55, %v136_v56  ;;  %v198_v63 = vcombine.low %v190_v54, %v197_v57  ;;  %v258_v0 = vrot.slane %v250_v58, %v533_v12 }
  0x39   :  { %280 = vrot.lane.b32.xlu1 %v232_v53, %s481_s2  ;;  %v265_v1 = vrot.slane %v251_v59, %v533_v12  ;;  %v234_v2 = vcombine.low %v140_v60, %v144_v61  ;;  %v46_v16 = vrot.slane %v41_v13, %v527_v5  ;;  %p457_p5 = por %p456_p4, %p455_p3 }
  0x3a   :  { %v241_v3 = vrot.slane %v233_v62, %v533_v12  ;;  %276 = vrot.lane.b32.xlu0 %v198_v63, %s481_s2 }
  0x3b   :  { %v266_v4 = vcombine.low %v258_v0, %v265_v1  ;;  %v248_v6 = vrot.slane %v234_v2, %v533_v12  ;;  %49 = vst.msk [vmem:[#allocation7] sm:$0x3] %vm48_vm0, %v46_v16  ;;  %p458_p6 = pnand %p457_p5, %p451_p2 }
  0x3d   :  { %284 = vrot.lane.b32.xlu1 %v266_v4, %s481_s2  ;;  %v249_v8 = vcombine.low %v241_v3, %v248_v6 }
  0x3f   :  { %282 = vrot.lane.b32.xlu0 %v249_v8, %s481_s2 }
  0x43   :  { %286 = vrot.lane.b32.xlu0 %v273_v9, %s481_s2 }
  0xa7   :  { %v279_v14 = vpop.permute.xlu1 %278 }
  0xa8   :  { %v275_v15 = vpop.permute.xlu0 %274  ;;  %v290_v18 = vrot.slane %v279_v14, 2 }
  0xa9   :  { %v288_v12 = vrot.slane %v275_v15, 2 }
  0xab   :  { %v281_v17 = vpop.permute.xlu1 %280 }
  0xac   :  { %v291_v19 = vrot.slane %v281_v17, 2  ;;  %v277_v20 = vpop.permute.xlu0 %276 }
  0xad   :  { %v289_v21 = vrot.slane %v277_v20, 2 }
  0xae   :  { %v301_v25 = vsel %vm295_vm1, %v290_v18, %v291_v19 }
  0xaf   :  { %v285_v23 = vpop.permute.xlu1 %284  ;;  %v296_v26 = vsel %vm295_vm1, %v288_v12, %v289_v21  ;;  %v299_v27 = vsel %vm295_vm1, %v289_v21, %v290_v18  ;;  %v302_v35 = vsel %vm297_vm2, %v279_v14, %v301_v25 }
  0xb0   :  { %v300_v5 = vsel %vm297_vm2, %v277_v20, %v299_v27  ;;  %v293_v28 = vrot.slane %v285_v23, 2  ;;  %v298_v29 = vsel %vm297_vm2, %v275_v15, %v296_v26  ;;  %v318_v41 = vadd.f32 %v302_v35, %v52_v34 }
  0xb1   :  { %v317_v30 = vadd.f32 %v300_v5, %v51_v22  ;;  %v283_v31 = vpop.permute.xlu0 %282  ;;  %v316_v32 = vadd.f32 %v298_v29, %v50_v24 }
  0xb2   :  { %v292_v33 = vrot.slane %v283_v31, 2 }
  0xb3   :  { %332 = vrot.lane.b32.xlu0 %v317_v30, %s481_s2  ;;  %330 = vrot.lane.b32.xlu1 %v316_v32, %s481_s2 }
  0xb4   :  { %v303_v37 = vsel %vm295_vm1, %v291_v19, %v292_v33  ;;  %v305_v38 = vsel %vm295_vm1, %v292_v33, %v293_v28 }
  0xb5   :  { %v287_v39 = vpop.permute.xlu0 %286  ;;  %v304_v40 = vsel %vm297_vm2, %v281_v17, %v303_v37  ;;  %v306_v43 = vsel %vm297_vm2, %v283_v31, %v305_v38 }
  0xb6   :  { %v294_v44 = vrot.slane %v287_v39, 2  ;;  %v319_v45 = vadd.f32 %v304_v40, %v53_v36  ;;  %v320_v48 = vadd.f32 %v306_v43, %v54_v42  ;;  %v322_v52 = vadd.f32 %v287_v39, %v56_v50 }
  0xb7   :  { %334 = vrot.lane.b32.xlu1 %v318_v41, %s481_s2 }
  0xb8   :  { %v307_v47 = vsel %vm295_vm1, %v293_v28, %v294_v44  ;;  %336 = vrot.lane.b32.xlu0 %v319_v45, %s481_s2 }
  0xb9   :  { %v308_v49 = vsel %vm297_vm2, %v285_v23, %v307_v47 }
  0xba   :  { %v321_v51 = vadd.f32 %v308_v49, %v55_v46 }
  0xbb   :  { %338 = vrot.lane.b32.xlu1 %v320_v48, %s481_s2 }
  0xbc   :  { %340 = vrot.lane.b32.xlu0 %v321_v51, %s481_s2 }
  0xbf   :  { %342 = vrot.lane.b32.xlu1 %v322_v52, %s481_s2 }
 0x125   :  { %v333_v53 = vpop.permute.xlu0 %332  ;;  %v331_v54 = vpop.permute.xlu1 %330 }
 0x126   :  { %v345_v55 = vrot.slane %v333_v53, 6  ;;  %v344_v56 = vrot.slane %v331_v54, 6 }
 0x128   :  { %v350_v57 = vsel %vm297_vm2, %v344_v56, %v331_v54  ;;  %v352_v58 = vsel %vm351_vm9, %v344_v56, %v345_v55 }
 0x129   :  { %v353_v59 = vsel %vm297_vm2, %v352_v58, %v333_v53  ;;  %377 = vst.msk [vmem:[#allocation7] sm:$0xff] %vm376_vm10, %v350_v57  ;;  %v335_v60 = vpop.permute.xlu1 %334 }
 0x12a   :  { %378 = vst [vmem:[#allocation7 + $0x8] sm:$0xff] %v353_v59  ;;  %v337_v61 = vpop.permute.xlu0 %336  ;;  %v346_v62 = vrot.slane %v335_v60, 6 }
 0x12b   :  { %v347_v63 = vrot.slane %v337_v61, 6 }
 0x12c   :  { %v354_v0 = vsel %vm351_vm9, %v345_v55, %v346_v62 }
 0x12d   :  { %v355_v1 = vsel %vm297_vm2, %v354_v0, %v335_v60  ;;  %v356_v2 = vsel %vm351_vm9, %v346_v62, %v347_v63  ;;  %v339_v3 = vpop.permute.xlu1 %338 }
 0x12e   :  { %v357_v4 = vsel %vm297_vm2, %v356_v2, %v337_v61  ;;  %379 = vst [vmem:[#allocation7 + $0x10] sm:$0xff] %v355_v1  ;;  %v341_v6 = vpop.permute.xlu0 %340  ;;  %v348_v7 = vrot.slane %v339_v3, 6 }
 0x12f   :  { %380 = vst [vmem:[#allocation7 + $0x18] sm:$0xff] %v357_v4  ;;  %v349_v8 = vrot.slane %v341_v6, 6 }
 0x130   :  { %v358_v9 = vsel %vm351_vm9, %v347_v63, %v348_v7 }
 0x131   :  { %v359_v10 = vsel %vm297_vm2, %v358_v9, %v339_v3  ;;  %v360_v11 = vsel %vm351_vm9, %v348_v7, %v349_v8  ;;  %v343_v13 = vpop.permute.xlu1 %342 }
 0x132   :  { %v361_v14 = vsel %vm297_vm2, %v360_v11, %v341_v6  ;;  %381 = vst [vmem:[#allocation7 + $0x20] sm:$0xff] %v359_v10  ;;  %v362_v15 = vsel %vm297_vm2, %v349_v8, %v343_v13 }
 0x133   :  { %382 = vst [vmem:[#allocation7 + $0x28] sm:$0xff] %v361_v14  ;;  %383 = vst [vmem:[#allocation7 + $0x30] sm:$0x3] %v362_v15 }
 0x134   :  { %461 = shalt.err (!%p458_p6)
}
 0x135   :  { %s462_s15 = scalar_lea.hbm %s614_s3, 800 }
 0x136   :  { %p463_p7 = scmp.ne.s32.totalorder %s614_s3, %s462_s15  ;;  %p466_p8 = scmp.lt.u32.totalorder %s462_s15, %s614_s3 }
 0x138   :  { %p468_p9 = pnand %p466_p8, %p463_p7 }
 0x13a   :  { %471 = shalt.err (!%p468_p9)
}
 0x13b   :  { %393 = dma.vmem_to_hbm [thread:$0]  %s391_s11, 800, %s614_s3, [#allocation4]  }
 0x13c   :  { %476 = dma.done.wait [#allocation4], 800  }
 0x13d   :  { %477 = vsyncadd [#allocation4], 4294966496 }
 0x13e   :  { %397 = vsyncpa [#allocation3], 1 }
 0x13f   :  { %398 = vsyncpa [#allocation6], 1 }
 0x140   :  { %399 = vsyncpa [#allocation4], 1 }

</bundles_post_ra>
